<compile_context>
chip_gen: v5e
topology: v5e:2x2
jax: 0.10.0
libtpu: 0.0.40
codegen_flags: <defaults>
</compile_context>

<pallas_src>
import jax
import jax.numpy as jnp
from jax import lax
from jax.experimental import pallas as pl
from jax.experimental.pallas import tpu as pltpu

_LANE = 128
_SUBLANE = 8


def _round_up(v, m):
    return -(-v // m) * m


def _padded_bytes(rows, cols, itemsize=4):
    """Bytes a (rows, cols) f32 tile actually occupies in VMEM ((8,128) padded)."""
    return _round_up(max(rows, 1), _SUBLANE) * _round_up(max(cols, 1), _LANE) * itemsize


def _vmem_capacity_bytes():
    try:
        return int(pltpu.get_tpu_info().vmem_capacity_bytes)
    except Exception:
        return 64 * 1024 * 1024  # conservative fallback: v7x per-TensorCore VMEM


def _tiles_bytes(tb, tk, O, k_tiled):
    """Padded VMEM footprint of all buffers for one pipeline configuration."""
    total = 2 * _padded_bytes(tb, tk)      # x tile, double-buffered
    total += 2 * _padded_bytes(O, tb)      # (O, TB) output tile
    total += 2 * _padded_bytes(O, tk)      # resident weight
    total += 2 * _padded_bytes(O, 1)       # resident bias column
    if k_tiled:
        total += _padded_bytes(O, tb)      # f32 accumulator scratch
    return total


def _choose_tiling(B, F, O, budget_bytes):
    # Feature (K) tile: keep full F resident if it fits next to a minimal batch
    # tile, otherwise halve in 128-lane steps (switches to the accumulator path).
    tk = F
    while tk > _LANE and _tiles_bytes(_SUBLANE, tk, O, True) > budget_bytes:
        tk = max(_LANE, _round_up(tk // 2, _LANE))
    k_tiled = tk < F

    # Batch tile: grow toward the VMEM budget (amortize ~0.35us/grid-step), but
    # keep >= ~8 grid steps for large B so both v7x cores get >=3-4 pipelined
    # steps each; keep TB a multiple of 128 (lane-dense output tile) unless the
    # whole batch fits in one block.
    tb = min(_round_up(B, _SUBLANE), 16384)
    while tb > _SUBLANE and _tiles_bytes(tb, tk, O, k_tiled) > budget_bytes:
        tb = max(_SUBLANE, _round_up(tb // 2, _SUBLANE))
    tb = min(tb, max(_round_up(pl.cdiv(B, 8), _LANE), 256))
    if tb >= B:
        tb = B                                   # single block: dims == full dims
    else:
        tb = max(_LANE, (tb // _LANE) * _LANE)   # lane-aligned batch tile
    return tb, tk, k_tiled


def _logreg_kernel(x_ref, w_ref, b_ref, o_ref):
    # x_ref: (TB, F); w_ref: (O, F) resident; b_ref: (O, 1) resident; o_ref: (O, TB)
    z = lax.dot_general(
        w_ref[...], x_ref[...],
        dimension_numbers=(((1,), (1,)), ((), ())),   # contract on F -> (O, TB)
        preferred_element_type=jnp.float32)
    z = z + b_ref[...]                                # broadcast bias along lanes
    o_ref[...] = jax.nn.sigmoid(z).astype(o_ref.dtype)


def _make_ktiled_kernel(F, TK):
    """P3 accumulator kernel for very large F*O (weight does not fit VMEM whole)."""

    def kernel(x_ref, w_ref, b_ref, o_ref, acc_ref):
        k = pl.program_id(1)

        @pl.when(k == 0)
        def _():
            acc_ref[...] = jnp.zeros_like(acc_ref)

        x = x_ref[...]
        w = w_ref[...]
        if F % TK != 0:
            # Mask the ragged feature tail so padded lanes cannot pollute the sum.
            xcol = lax.broadcasted_iota(jnp.int32, x.shape, 1) + k * TK
            x = jnp.where(xcol < F, x, 0.0)
            wcol = lax.broadcasted_iota(jnp.int32, w.shape, 1) + k * TK
            w = jnp.where(wcol < F, w, 0.0)

        acc_ref[...] += lax.dot_general(
            w, x,
            dimension_numbers=(((1,), (1,)), ((), ())),
            preferred_element_type=jnp.float32)

        @pl.when(k == pl.num_programs(1) - 1)
        def _():
            o_ref[...] = jax.nn.sigmoid(acc_ref[...] + b_ref[...]).astype(o_ref.dtype)

    return kernel


def simple_logistic_regression(x, weight, bias):
    """x: (B, F) f32; weight: (O, F) f32 (PyTorch layout); bias: (O,) f32 -> (B, O) f32."""
    B, F = x.shape
    O = weight.shape[0]

    x = x.astype(jnp.float32)
    weight = weight.astype(jnp.float32)
    b_col = bias.reshape(O, 1).astype(jnp.float32)
    # TODO(synk): optionally accept bf16 x/weight (f32 accumulation) to halve HBM
    # traffic on this bandwidth-bound kernel if the model tolerates it.

    cap = _vmem_capacity_bytes()
    budget = int(0.70 * cap)
    TB, TK, k_tiled = _choose_tiling(B, F, O, budget)

    need = _tiles_bytes(TB, TK, O, k_tiled)
    vmem_limit = int(min(max(need + (4 << 20), 32 << 20), int(0.85 * cap)))

    if not k_tiled:
        grid = (pl.cdiv(B, TB),)
        in_specs = [
            pl.BlockSpec((TB, F), lambda i: (i, 0)),   # batch-tiled x
            pl.BlockSpec((O, F), lambda i: (0, 0)),    # resident weight
            pl.BlockSpec((O, 1), lambda i: (0, 0)),    # resident bias column
        ]
        out_specs = pl.BlockSpec((O, TB), lambda i: (0, i))
        scratch = []
        kernel = _logreg_kernel
        dims = ("parallel",)
    else:
        grid = (pl.cdiv(B, TB), pl.cdiv(F, TK))
        in_specs = [
            pl.BlockSpec((TB, TK), lambda i, k: (i, k)),
            pl.BlockSpec((O, TK), lambda i, k: (0, k)),
            pl.BlockSpec((O, 1), lambda i, k: (0, 0)),
        ]
        out_specs = pl.BlockSpec((O, TB), lambda i, k: (0, i))
        scratch = [pltpu.VMEM((O, TB), jnp.float32)]
        kernel = _make_ktiled_kernel(F, TK)
        dims = ("parallel", "arbitrary")

    out_t = pl.pallas_call(
        kernel,
        out_shape=jax.ShapeDtypeStruct((O, B), jnp.float32),
        grid_spec=pltpu.PrefetchScalarGridSpec(
            num_scalar_prefetch=0,
            grid=grid,
            in_specs=in_specs,
            out_specs=out_specs,
            scratch_shapes=scratch,
        ),
        compiler_params=pltpu.CompilerParams(
            dimension_semantics=dims,
            vmem_limit_bytes=vmem_limit,
        ),
    )(x, weight, b_col)

    # (O, B) -> (B, O); effectively a free reshape for O == 1.
    return out_t.T


if __name__ == "__main__":
    # Small shapes consistent with the module: input_features=32, output_features=1
    batch, input_features, output_features = 8, 32, 1

    key = jax.random.PRNGKey(0)
    kx, kw, kb = jax.random.split(key, 3)

    x = jax.random.normal(kx, (batch, input_features), dtype=jnp.float32)
    # Deterministic parameter init (mimics nn.Linear uniform(-1/sqrt(F), 1/sqrt(F)))
    bound = 1.0 / (input_features ** 0.5)
    weight = jax.random.uniform(kw, (output_features, input_features),
                                minval=-bound, maxval=bound, dtype=jnp.float32)
    bias = jax.random.uniform(kb, (output_features,),
                              minval=-bound, maxval=bound, dtype=jnp.float32)

    out = simple_logistic_regression(x, weight, bias)
    out = jax.block_until_ready(out)

    # Reference check in plain JAX
    ref = jax.nn.sigmoid(x @ weight.T + bias)
    assert out.shape == (batch, output_features)
    assert jnp.allclose(out, ref, atol=1e-5), "mismatch vs reference"

    print("KERNEL_OK")
</pallas_src>

<mosaic_0001>
module attributes {stable_mosaic.version = 11 : i64} {
  func.func @_logreg_kernel(%arg0: i32, %arg1: memref<8x32xf32, #tpu.memory_space<vmem>>, %arg2: memref<1x32xf32, #tpu.memory_space<vmem>>, %arg3: memref<1x1xf32, #tpu.memory_space<vmem>>, %arg4: memref<1x8xf32, #tpu.memory_space<vmem>>) attributes {dimension_semantics = [#tpu.dimension_semantics<parallel>], iteration_bounds = array<i64: 1>, scalar_prefetch = 0 : i64, scratch_operands = 0 : i64, tpu.core_type = #tpu.core_type<tc>, window_params = [{transform_indices = @transform_0, window_bounds = array<i64: 8, 32>}, {pipeline_mode = #tpu.pipeline_mode<synchronous>, transform_indices = @transform_1, window_bounds = array<i64: 1, 32>}, {pipeline_mode = #tpu.pipeline_mode<synchronous>, transform_indices = @transform_2, window_bounds = array<i64: 1, 1>}, {transform_indices = @transform_3, window_bounds = array<i64: 1, 8>}]} {
    %c0 = arith.constant 0 : index
    %c0_0 = arith.constant 0 : index
    %0 = vector.load %arg2[%c0, %c0_0] : memref<1x32xf32, #tpu.memory_space<vmem>>, vector<1x32xf32>
    %c0_1 = arith.constant 0 : index
    %c0_2 = arith.constant 0 : index
    %1 = vector.load %arg1[%c0_1, %c0_2] : memref<8x32xf32, #tpu.memory_space<vmem>>, vector<8x32xf32>
    %cst = arith.constant dense<0.000000e+00> : vector<1x8xf32>
    %2 = tpu.matmul %0, %1, %cst {dimension_numbers = #tpu.dot_dimension_numbers<[1], [1], [0], [0], [0, 0, 1, 0], [], []>} : vector<1x32xf32>, vector<8x32xf32>, vector<1x8xf32> -> vector<1x8xf32>
    %c0_3 = arith.constant 0 : index
    %c0_4 = arith.constant 0 : index
    %3 = vector.load %arg3[%c0_3, %c0_4] : memref<1x1xf32, #tpu.memory_space<vmem>>, vector<1x1xf32>
    %4 = vector.broadcast %3 : vector<1x1xf32> to vector<1x8xf32>
    %5 = arith.addf %2, %4 : vector<1x8xf32>
    %6 = arith.negf %5 : vector<1x8xf32>
    %7 = math.exp %6 : vector<1x8xf32>
    %cst_5 = arith.constant 1.000000e+00 : f32
    %8 = vector.broadcast %cst_5 : f32 to vector<1x8xf32>
    %9 = arith.addf %8, %7 : vector<1x8xf32>
    %10 = arith.divf %8, %9 : vector<1x8xf32>
    %c0_6 = arith.constant 0 : index
    %c0_7 = arith.constant 0 : index
    %11 = vector.load %arg4[%c0_6, %c0_7] : memref<1x8xf32, #tpu.memory_space<vmem>>, vector<1x8xf32>
    tpu.vector_store %arg4[%c0_6, %c0_7], %10 {strides = array<i32>} : memref<1x8xf32, #tpu.memory_space<vmem>>, vector<1x8xf32>,
    return
  }
  func.func @transform_0(%arg0: i32) -> (i32, i32) {
    %c0_i32 = arith.constant 0 : i32
    %c0_i32_0 = arith.constant 0 : i32
    return %arg0, %c0_i32 : i32, i32
  }
  func.func @transform_1(%arg0: i32) -> (i32, i32) {
    %c0_i32 = arith.constant 0 : i32
    %c0_i32_0 = arith.constant 0 : i32
    %c0_i32_1 = arith.constant 0 : i32
    return %c0_i32, %c0_i32_0 : i32, i32
  }
  func.func @transform_2(%arg0: i32) -> (i32, i32) {
    %c0_i32 = arith.constant 0 : i32
    %c0_i32_0 = arith.constant 0 : i32
    %c0_i32_1 = arith.constant 0 : i32
    return %c0_i32, %c0_i32_0 : i32, i32
  }
  func.func @transform_3(%arg0: i32) -> (i32, i32) {
    %c0_i32 = arith.constant 0 : i32
    %c0_i32_0 = arith.constant 0 : i32
    return %c0_i32, %arg0 : i32, i32
  }
}

</mosaic_0001>

<bundles_post_ra>
// kernel: tpu_custom_call.1
= control target key start
LH: loop header
LB: loop body
LE: loop exit
PB: predicated region body
PF: predicated region fallthrough
CT: control target
= control target key end

     0   :  { %s203_s0 = inlined_call_operand.hbm [shape: f32[8,32], index: 0, kind: input, shape index: {}]   ;;  %s204_s1 = inlined_call_operand.vmem [shape: f32[1,32], index: 1, kind: input, shape index: {}]   ;;  %s205_s2 = inlined_call_operand.<no memory space> [shape: f32[1,1], index: 2, kind: input, shape index: {}]   ;;  %s206_s3 = inlined_call_operand.hbm [shape: f32[1,8], index: 3, kind: output, shape index: {}]  }
   0x1   :  { %v8_v0 = vstv %s205_s2 }
   0x2   :  { %9 = vst [vmem:[#allocation2] sm:$0x1] %v8_v0 }
   0x3   :  { %10 = vsyncpa [#allocation4], 0 }
   0x4   :  { %11 = vsyncpa [#allocation5], 0  ;;  %s17_s16 = sshll.u32 %s203_s0, 4  ;;  %s168_s17 = smov [#allocation3]   ;;  %s18_s16 = int_to_ptr.hbm [resolvable:$true] %s17_s16 }
   0x5   :  { %s19_s18 = sshll.u32 %s168_s17, 4  ;;  %s20_s18 = int_to_ptr.vmem [resolvable:$true] %s19_s18 }
   0x6   :  { %22 = dma.hbm_to_vmem [thread:$0]  %s18_s16, 128, %s20_s18, [#allocation4]  }
   0x7   :  { %164 = dma.done.wait [#allocation4], 128  }
   0x8   :  { %165 = vsyncadd [#allocation4], 4294967168  ;;  %v169_v1 = vmov 0   ;;  %vm40_vm0 = vcmask 261120   ;;  %v32_v2 = vld [vmem:[#allocation3] sm:$0xff]  ;;  %s170_s0 = smov [#allocation6]  }
   0x9   :  { %111 = vset.pattern.permute.xlu0 %v169_v1  ;;  %v33_v3 = vld [vmem:[#allocation2] sm:$0x1]  ;;  %105 = vmatpush.xpose.msk.msra.mxu0 %vm40_vm0, %v32_v2  ;;  %s95_s22 = sshll.u32 %s206_s3, 4  ;;  %vm86_vm4 = vcmask 57344   ;;  %s96_s22 = int_to_ptr.hbm [resolvable:$true] %s95_s22 }
   0xa   :  { %v31_v4 = vld [vmem:[%s204_s1] sm:$0x1]  ;;  %36 = vperm.xlu0 %111, %v33_v3   ;;  %s93_s1 = sshll.u32 %s170_s0, 4  ;;  %s94_s1 = int_to_ptr.vmem [resolvable:$true] %s93_s1 }
   0xc   :  { %106 = vmatmul.msk.f32.vlgmr.msra.gmra.mxu0 %vm40_vm0, %v31_v4 }
  0x7c   :  { %v37_v5 = vpop.permute.xlu0 %36 }
  0x7d   :  { %v39_v6 = vperm.slane %v37_v5, 0 }
  0x89   :  { %v64_v7 = vpop.f32.mrf.mxu0 }
  0x8a   :  { %v65_v8 = vadd.f32 %v64_v7, %v39_v6 }
  0x8c   :  { %v107_v9 = vmul.f32 -1.442695, %v65_v8 }
  0x8e   :  { %112 = vpow2.f32 %v107_v9 }
  0x94   :  { %v113_v10 = vpop.eup %112 }
  0x95   :  { %v70_v11 = vadd.f32 1.0, %v113_v10 }
  0x97   :  { %114 = vrcp.f32 %v70_v11  ;;  %v82_v15 = vand.u32 2147483648, %v70_v11  ;;  %v80_v17 = vand.u32 2147483647, %v70_v11  ;;  %vm76_vm2 = vweird.f32 %v70_v11 }
  0x99   :  { %v83_v19 = vor.u32 1.1754944e-38, %v82_v15  ;;  %vm81_vm5 = vcmp.eq.f32.partialorder %v80_v17, 8.507059e+37 }
  0x9d   :  { %v115_v12 = vpop.eup %114 }
  0x9e   :  { %v72_v13 = vmul.f32 %v115_v12, %v70_v11  ;;  %vm77_vm1 = vweird.f32 %v115_v12 }
  0x9f   :  { %vm78_vm3 = vmor %vm76_vm2, %vm77_vm1 }
  0xa0   :  { %v73_v14 = vsub.f32 1.0, %v72_v13 }
  0xa2   :  { %v74_v16 = vmul.f32 %v115_v12, %v73_v14 }
  0xa4   :  { %v75_v18 = vadd.f32 %v115_v12, %v74_v16 }
  0xa6   :  { %v79_v20 = vsel %vm78_vm3, %v115_v12, %v75_v18 }
  0xa7   :  { %v84_v21 = vsel %vm81_vm5, %v83_v19, %v79_v20 }
  0xa8   :  { %87 = vst.msk [vmem:[#allocation6] sm:$0x1] %vm86_vm4, %v84_v21 }
  0xa9   :  { %98 = dma.vmem_to_hbm [thread:$0]  %s94_s1, 16, %s96_s22, [#allocation5]  }
  0xaa   :  { %166 = dma.done.wait [#allocation5], 16  }
  0xab   :  { %167 = vsyncadd [#allocation5], 4294967280 }
  0xac   :  { %103 = vsyncpa [#allocation4], 1 }
  0xad   :  { %104 = vsyncpa [#allocation5], 1 }

</bundles_post_ra>
